<compile_context>
chip_gen: v5e
topology: v5e:2x2
jax: 0.10.0
libtpu: 0.0.40
codegen_flags: <defaults>
</compile_context>

<pallas_src>
import functools

import jax
import jax.numpy as jnp
from jax.experimental import pallas as pl
from jax.experimental.pallas import tpu as pltpu


# --------------------------------------------------------------------------
# VMEM / tile helpers
# --------------------------------------------------------------------------
def _vmem_limit_bytes():
    """Scoped-VMEM limit: ~75% of physical, capped at 96 MiB.
    v5e/v6e have 128 MiB physical (default scoped limit only 16/32 MiB);
    v7x has 64 MiB physical, so the cap must stay well below that."""
    cap = 64 << 20  # conservative fallback (v7x per-TC)
    try:
        info = pltpu.get_tpu_info()
        cap = int(getattr(info, "vmem_capacity_bytes", cap))
    except Exception:
        pass
    return int(min(cap * 3 // 4, 96 << 20))


def _divisor_tile(n, max_tile, candidates=(1024, 512, 256, 128, 64, 32)):
    """Largest candidate <= max_tile that divides n; fall back to full extent
    (block_shape == array dim is always legal)."""
    for t in candidates:
        if t <= max_tile and n % t == 0:
            return t
    return n


def _stage_a_tile(n):
    # >=2 grid steps so both v7x TensorCores get work and pipelining engages.
    return _divisor_tile(n, max(n // 2, 32))


def _stage_b_tile(n, c, vmem_limit):
    # Per-step VMEM footprint (bytes), double-buffered where applicable:
    #   adj int8 row tile           : 2 * TM * N
    #   f32 e/p temporaries (live)  : ~8 * TM * N
    #   resident full Wh            :  8 * N * C
    #   f1 tile + f2 row + z output :  8 * TM + 8 * N + 8 * TM * C
    budget = int(vmem_limit * 0.6)
    fixed = 8 * n * c + 8 * n
    per_row = 10 * n + 8 * c + 8
    tm_cap = max((budget - fixed) // per_row, 32)
    tm_cap = min(tm_cap, max(n // 2, 32))  # >=2 grid steps (megacore)
    return _divisor_tile(n, tm_cap)
    # TODO(synk): for N of several thousand, Stage B should become a
    # flash-style (row x key-chunk) grid with online-softmax accumulators so
    # VMEM no longer grows linearly with N.


def _stage_c_tiles(n):
    tn = _divisor_tile(n, 1024)                                    # lane-dense out
    tm = _divisor_tile(n, max(n // 2, 32), candidates=(512, 256, 128, 64, 32))
    return tm, tn


# --------------------------------------------------------------------------
# Stage A: Wh = x @ W  and  f12 = Wh @ [a1 a2]   (row-tiled)
# --------------------------------------------------------------------------
def _wh_kernel(x_ref, w_ref, a12_ref, wh_ref, f12_ref):
    wh = jnp.dot(x_ref[...], w_ref[...], preferred_element_type=jnp.float32)
    wh_ref[...] = wh
    # f1_i = <Wh_i, a1>, f2_i = <Wh_i, a2> -- hoisted out of the per-tile
    # attention loop; Wh is already in vregs so this is essentially free.
    f12_ref[...] = jnp.dot(wh, a12_ref[...], preferred_element_type=jnp.float32)


# --------------------------------------------------------------------------
# Stage B: masked attention softmax + Z = ELU(att @ Wh)  (row-tiled)
# --------------------------------------------------------------------------
def _attention_kernel(adj_ref, wh_ref, f1_ref, f2_ref, z_ref, *, alpha):
    wh = wh_ref[...]                                # (N, C)  resident block
    e = f1_ref[...] + f2_ref[...]                   # (TM,1)+(1,N) -> (TM, N)
    e = jnp.where(e > 0, e, alpha * e)              # LeakyReLU
    masked = jnp.where(adj_ref[...] > 0, e, -9e15)  # int8 adjacency mask

    m = jnp.max(masked, axis=1, keepdims=True)
    p = jnp.exp(masked - m)
    denom = jnp.sum(p, axis=1, keepdims=True)

    # Normalize AFTER the matmul: softmax normalization commutes with the row
    # matmul, so we scale the (TM, C) result instead of the (TM, N) probs
    # (~N/C fewer VPU multiplies).
    h = jnp.dot(p, wh, preferred_element_type=jnp.float32)           # (TM, C)
    h = h * pl.reciprocal(denom, approx=False)
    # TODO(synk): F.dropout(attention) skipped (eval-mode identity).
    z_ref[...] = jnp.where(h > 0, h, jnp.expm1(h))                   # ELU


# --------------------------------------------------------------------------
# Stage C: ZZ = sigmoid(Z @ Z^T)  (2-D tiled, contraction on axis 1/1)
# --------------------------------------------------------------------------
def _zz_kernel(zi_ref, zj_ref, zz_ref):
    zz = jax.lax.dot_general(zi_ref[...], zj_ref[...],
                             (((1,), (1,)), ((), ())),
                             preferred_element_type=jnp.float32)
    zz_ref[...] = jax.nn.sigmoid(zz).astype(zz_ref.dtype)


# --------------------------------------------------------------------------
# Wrapper
# --------------------------------------------------------------------------
def gat_forward(x, adj, W, a, *, alpha=0.2, out_dtype=jnp.float32):
    N, F = x.shape
    C = W.shape[1]

    x = x.astype(jnp.float32)
    W = W.astype(jnp.float32)
    a12 = jnp.stack([a[:C], a[C:]], axis=1).astype(jnp.float32)      # (C, 2)
    # adj is only ever used as a mask -> ship it as int8 (4x less DMA traffic).
    adj_i8 = (adj > 0).astype(jnp.int8)

    vmem_limit = _vmem_limit_bytes()
    TA = _stage_a_tile(N)
    TB = _stage_b_tile(N, C, vmem_limit)
    TMC, TNC = _stage_c_tiles(N)

    # ---------------- Stage A: Wh and f12 ----------------
    wh, f12 = pl.pallas_call(
        _wh_kernel,
        out_shape=(jax.ShapeDtypeStruct((N, C), jnp.float32),
                   jax.ShapeDtypeStruct((N, 2), jnp.float32)),
        grid=(N // TA,),
        in_specs=[
            pl.BlockSpec((TA, F), lambda i: (i, 0)),
            pl.BlockSpec((F, C), lambda i: (0, 0)),
            pl.BlockSpec((C, 2), lambda i: (0, 0)),
        ],
        out_specs=[
            pl.BlockSpec((TA, C), lambda i: (i, 0)),
            pl.BlockSpec((TA, 2), lambda i: (i, 0)),
        ],
        compiler_params=pltpu.CompilerParams(
            dimension_semantics=("parallel",),
            vmem_limit_bytes=vmem_limit),
        cost_estimate=pl.CostEstimate(
            flops=2 * N * F * C + 4 * N * C,
            transcendentals=0,
            bytes_accessed=4 * (N * F + F * C + N * C + 2 * N)),
    )(x, W, a12)

    f1 = f12[:, 0:1]                        # (N, 1)
    f2_row = f12[:, 1:2].reshape(1, N)      # (1, N)  tiny XLA transpose

    # ---------------- Stage B: attention + Z ----------------
    attn_kernel = functools.partial(_attention_kernel, alpha=alpha)
    z = pl.pallas_call(
        attn_kernel,
        out_shape=jax.ShapeDtypeStruct((N, C), jnp.float32),
        grid=(N // TB,),
        in_specs=[
            pl.BlockSpec((TB, N), lambda i: (i, 0)),   # adj row tile (int8)
            pl.BlockSpec((N, C), lambda i: (0, 0)),    # full Wh (resident)
            pl.BlockSpec((TB, 1), lambda i: (i, 0)),   # f1 rows of this tile
            pl.BlockSpec((1, N), lambda i: (0, 0)),    # f2 row (resident)
        ],
        out_specs=pl.BlockSpec((TB, C), lambda i: (i, 0)),
        compiler_params=pltpu.CompilerParams(
            dimension_semantics=("parallel",),
            vmem_limit_bytes=vmem_limit),
        cost_estimate=pl.CostEstimate(
            flops=2 * N * N * C + 8 * N * N,
            transcendentals=N * N + N * C,
            bytes_accessed=N * N + 4 * (2 * N * C + 2 * N)),
    )(adj_i8, wh, f1, f2_row)

    # ---------------- Stage C: ZZ = sigmoid(Z Z^T) ----------------
    # TODO(synk): the np.savetxt embedding dumps of the original module are
    # host-side file I/O with no kernel equivalent and are skipped.
    zz = pl.pallas_call(
        _zz_kernel,
        out_shape=jax.ShapeDtypeStruct((N, N), out_dtype),
        grid=(N // TMC, N // TNC),
        in_specs=[
            pl.BlockSpec((TMC, C), lambda i, j: (i, 0)),
            pl.BlockSpec((TNC, C), lambda i, j: (j, 0)),
        ],
        out_specs=pl.BlockSpec((TMC, TNC), lambda i, j: (i, j)),
        compiler_params=pltpu.CompilerParams(
            dimension_semantics=("parallel", "parallel"),
            vmem_limit_bytes=vmem_limit),
        cost_estimate=pl.CostEstimate(
            flops=2 * N * N * C,
            transcendentals=N * N,
            bytes_accessed=jnp.dtype(out_dtype).itemsize * N * N + 8 * N * C),
    )(z, z)

    return zz


def _reference(x, adj, W, a, alpha):
    # pure-JAX reference of the same math (for a sanity check)
    C = W.shape[1]
    Wh = x @ W
    f1 = Wh @ a[:C].reshape(-1, 1)
    f2 = Wh @ a[C:].reshape(-1, 1)
    e = f1 + f2.T
    e = jnp.where(e > 0, e, alpha * e)
    masked = jnp.where(adj > 0, e, -9e15)
    att = jax.nn.softmax(masked, axis=1)
    Z = jax.nn.elu(att @ Wh)
    return jax.nn.sigmoid(Z @ Z.T)


if __name__ == "__main__":
    key = jax.random.PRNGKey(0)
    k1, k2, k3, k4 = jax.random.split(key, 4)

    N, nfeat, nclass = 256, 64, 8
    alpha = 0.2

    x = jax.random.normal(k1, (N, nfeat), dtype=jnp.float32)
    # random symmetric adjacency with self-loops
    raw = jax.random.uniform(k2, (N, N))
    adj = ((raw + raw.T) > 1.8).astype(jnp.float32)
    adj = jnp.maximum(adj, jnp.eye(N, dtype=jnp.float32))

    # GraphAttention parameters: W (nfeat, nclass), a (2*nclass,)
    W = jax.random.normal(k3, (nfeat, nclass), dtype=jnp.float32) * 0.1
    a = jax.random.normal(k4, (2 * nclass,), dtype=jnp.float32) * 0.1

    out = jax.block_until_ready(gat_forward(x, adj, W, a, alpha=alpha))

    ref = _reference(x, adj, W, a, alpha)
    assert out.shape == (N, N)
    assert jnp.allclose(out, ref, atol=1e-5, rtol=1e-5), "mismatch vs reference"

    print("KERNEL_OK")
</pallas_src>

<mosaic_0001>
module attributes {stable_mosaic.version = 11 : i64} {
  func.func @_wh_kernel(%arg0: i32, %arg1: memref<128x64xf32, #tpu.memory_space<vmem>>, %arg2: memref<64x8xf32, #tpu.memory_space<vmem>>, %arg3: memref<8x2xf32, #tpu.memory_space<vmem>>, %arg4: memref<128x8xf32, #tpu.memory_space<vmem>>, %arg5: memref<128x2xf32, #tpu.memory_space<vmem>>) attributes {dimension_semantics = [#tpu.dimension_semantics<parallel>], iteration_bounds = array<i64: 2>, scalar_prefetch = 0 : i64, scratch_operands = 0 : i64, tpu.core_type = #tpu.core_type<tc>, window_params = [{transform_indices = @transform_0, window_bounds = array<i64: 128, 64>}, {pipeline_mode = #tpu.pipeline_mode<synchronous>, transform_indices = @transform_1, window_bounds = array<i64: 64, 8>}, {pipeline_mode = #tpu.pipeline_mode<synchronous>, transform_indices = @transform_2, window_bounds = array<i64: 8, 2>}, {transform_indices = @transform_3, window_bounds = array<i64: 128, 8>}, {transform_indices = @transform_4, window_bounds = array<i64: 128, 2>}]} {
    %c0 = arith.constant 0 : index
    %c0_0 = arith.constant 0 : index
    %0 = vector.load %arg1[%c0, %c0_0] : memref<128x64xf32, #tpu.memory_space<vmem>>, vector<128x64xf32>
    %c0_1 = arith.constant 0 : index
    %c0_2 = arith.constant 0 : index
    %1 = vector.load %arg2[%c0_1, %c0_2] : memref<64x8xf32, #tpu.memory_space<vmem>>, vector<64x8xf32>
    %cst = arith.constant dense<0.000000e+00> : vector<128x8xf32>
    %2 = tpu.matmul %0, %1, %cst {dimension_numbers = #tpu.dot_dimension_numbers<[1], [0], [0], [1], [0, 0, 1, 1], [], []>} : vector<128x64xf32>, vector<64x8xf32>, vector<128x8xf32> -> vector<128x8xf32>
    %c0_3 = arith.constant 0 : index
    %c0_4 = arith.constant 0 : index
    %3 = vector.load %arg4[%c0_3, %c0_4] : memref<128x8xf32, #tpu.memory_space<vmem>>, vector<128x8xf32>
    tpu.vector_store %arg4[%c0_3, %c0_4], %2 {strides = array<i32>} : memref<128x8xf32, #tpu.memory_space<vmem>>, vector<128x8xf32>,
    %c0_5 = arith.constant 0 : index
    %c0_6 = arith.constant 0 : index
    %4 = vector.load %arg3[%c0_5, %c0_6] : memref<8x2xf32, #tpu.memory_space<vmem>>, vector<8x2xf32>
    %cst_7 = arith.constant dense<0.000000e+00> : vector<128x2xf32>
    %5 = tpu.matmul %2, %4, %cst_7 {dimension_numbers = #tpu.dot_dimension_numbers<[1], [0], [0], [1], [0, 0, 1, 1], [], []>} : vector<128x8xf32>, vector<8x2xf32>, vector<128x2xf32> -> vector<128x2xf32>
    %c0_8 = arith.constant 0 : index
    %c0_9 = arith.constant 0 : index
    %6 = vector.load %arg5[%c0_8, %c0_9] : memref<128x2xf32, #tpu.memory_space<vmem>>, vector<128x2xf32>
    tpu.vector_store %arg5[%c0_8, %c0_9], %5 {strides = array<i32>} : memref<128x2xf32, #tpu.memory_space<vmem>>, vector<128x2xf32>,
    return
  }
  func.func @transform_0(%arg0: i32) -> (i32, i32) {
    %c0_i32 = arith.constant 0 : i32
    %c0_i32_0 = arith.constant 0 : i32
    return %arg0, %c0_i32 : i32, i32
  }
  func.func @transform_1(%arg0: i32) -> (i32, i32) {
    %c0_i32 = arith.constant 0 : i32
    %c0_i32_0 = arith.constant 0 : i32
    %c0_i32_1 = arith.constant 0 : i32
    return %c0_i32, %c0_i32_0 : i32, i32
  }
  func.func @transform_2(%arg0: i32) -> (i32, i32) {
    %c0_i32 = arith.constant 0 : i32
    %c0_i32_0 = arith.constant 0 : i32
    %c0_i32_1 = arith.constant 0 : i32
    return %c0_i32, %c0_i32_0 : i32, i32
  }
  func.func @transform_3(%arg0: i32) -> (i32, i32) {
    %c0_i32 = arith.constant 0 : i32
    %c0_i32_0 = arith.constant 0 : i32
    return %arg0, %c0_i32 : i32, i32
  }
  func.func @transform_4(%arg0: i32) -> (i32, i32) {
    %c0_i32 = arith.constant 0 : i32
    %c0_i32_0 = arith.constant 0 : i32
    return %arg0, %c0_i32 : i32, i32
  }
}

</mosaic_0001>

<bundles_post_ra>
// kernel: tpu_custom_call.1
= control target key start
LH: loop header
LB: loop body
LE: loop exit
PB: predicated region body
PF: predicated region fallthrough
CT: control target
= control target key end

     0   :  { %s694_s15 = smov 0   ;;  %s864_s0 = inlined_call_operand.vmem [shape: f32[256,64], index: 0, kind: input, shape index: {}]   ;;  %s865_s1 = inlined_call_operand.vmem [shape: f32[64,8], index: 1, kind: input, shape index: {}]   ;;  %s866_s2 = inlined_call_operand.vmem [shape: f32[8,2], index: 2, kind: input, shape index: {}]   ;;  %s867_s3 = inlined_call_operand.vmem [shape: f32[256,8], index: 3, kind: output, shape index: {0}]   ;;  %s868_s4 = inlined_call_operand.vmem [shape: f32[256,2], index: 4, kind: output, shape index: {1}]  }
   0x1 LB: > { %s591_s16 = sadd.s32 4294967295, %s667_s15   ;;  %p595_p0 = scmp.ge.s32.totalorder %s667_s15, 1  ;;  %s667_s15 = sphi %s694_s15, %s15_s15  }
   0x2   : > { %p166_p1 = scmp.lt.s32.totalorder %s667_s15, 3 }
   0x4   : > { %p167_p2 = pnand %p595_p0, %p166_p1 }
   0x5   : > { %s596_s21 = sshll.u32 (!%p167_p2), %s591_s16, 4 }
   0x6   : > { %170 = sbr.rel (%p167_p2) target bundleno = 356 (0x164), region = 32  ;;  %p198_p3 = scmp.lt.s32.totalorder (!%p167_p2), %s596_s21, 31 }
   0xb   : > { %v238_v0 = vld [vmem:[%s865_s1 + $0x38] sm:$0xff]  ;;  %v237_v1 = vld [vmem:[%s865_s1 + $0x30] sm:$0xff]  ;;  %v236_v2 = vld [vmem:[%s865_s1 + $0x28] sm:$0xff]  ;;  %s870_s21 = smov (!%p198_p3, %s596_s21), 31  ;;  %vm239_vm0 = vcmask 523264   ;;  %vm353_vm1 = vcmask 64512  }
   0xc   : > { %296 = vmatpush.msra.mxu0 %v238_v0  ;;  %636 = vmatpush.msra.mxu2 %v238_v0  ;;  %v235_v3 = vld [vmem:[%s865_s1 + $0x20] sm:$0xff]  ;;  %v234_v4 = vld [vmem:[%s865_s1 + $0x18] sm:$0xff]  ;;  %s717_s28 = sshll.u32 %s870_s21, 3  ;;  %v233_v5 = vld [vmem:[%s865_s1 + $0x10] sm:$0xff]  ;;  %vm484_vm2 = vcmask 15360  }
   0xd   : > { %637 = vmatpush.msra.mxu3 %v238_v0  ;;  %v232_v6 = vld [vmem:[%s865_s1 + $0x8] sm:$0xff]  ;;  %s729_s9 = scalar_lea.vmem %s864_s0, %s717_s28  ;;  %v231_v7 = vld [vmem:[%s865_s1] sm:$0xff]  ;;  %s773_s17 = scalar_lea.vmem %s867_s3, %s717_s28 }
   0xe   : > { %297 = vmatpush.msra.mxu0 %v237_v1  ;;  %638 = vmatpush.msra.mxu2 %v237_v1  ;;  %v215_v8 = vld [vmem:[%s729_s9] sm:$0xff]  ;;  %v222_v9 = vld [vmem:[%s729_s9 + $0x38] sm:$0xff]  ;;  %v216_v10 = vld [vmem:[%s729_s9 + $0x8] sm:$0xff]  ;;  %s827_s20 = scalar_lea.vmem %s868_s4, %s717_s28 }
   0xf   : > { %639 = vmatpush.msra.mxu3 %v237_v1  ;;  %v223_v11 = vld [vmem:[%s729_s9 + $0x40] sm:$0xff]  ;;  %v217_v12 = vld [vmem:[%s729_s9 + $0x10] sm:$0xff]  ;;  %v224_v13 = vld [vmem:[%s729_s9 + $0x48] sm:$0xff] }
  0x10   : > { %298 = vmatpush.msra.mxu0 %v236_v2  ;;  %640 = vmatpush.msra.mxu2 %v236_v2  ;;  %v218_v14 = vld [vmem:[%s729_s9 + $0x18] sm:$0xff]  ;;  %v225_v15 = vld [vmem:[%s729_s9 + $0x50] sm:$0xff]  ;;  %v219_v17 = vld [vmem:[%s729_s9 + $0x20] sm:$0xff] }
  0x11   : > { %641 = vmatpush.msra.mxu3 %v236_v2  ;;  %v230_v16 = vld [vmem:[%s729_s9 + $0x78] sm:$0xff]  ;;  %v220_v19 = vld [vmem:[%s729_s9 + $0x28] sm:$0xff]  ;;  %v227_v20 = vld [vmem:[%s729_s9 + $0x60] sm:$0xff] }
  0x12   : > { %299 = vmatpush.msra.mxu0 %v235_v3  ;;  %642 = vmatpush.msra.mxu2 %v235_v3  ;;  %v226_v18 = vld [vmem:[%s729_s9 + $0x58] sm:$0xff]  ;;  %v221_v21 = vld [vmem:[%s729_s9 + $0x30] sm:$0xff]  ;;  %v228_v22 = vld [vmem:[%s729_s9 + $0x68] sm:$0xff] }
  0x13   : > { %643 = vmatpush.msra.mxu3 %v235_v3  ;;  %v229_v23 = vld [vmem:[%s729_s9 + $0x70] sm:$0xff]  ;;  %v370_v24 = vld [vmem:[%s866_s2] sm:$0xff] }
  0x14   : > { %300 = vmatpush.msra.mxu0 %v234_v4  ;;  %644 = vmatpush.msra.mxu2 %v234_v4 }
  0x15   : > { %645 = vmatpush.msra.mxu3 %v234_v4  ;;  %434 = vmatpush.msra.mxu1 %v370_v24 }
  0x16   : > { %301 = vmatpush.msra.mxu0 %v233_v5  ;;  %646 = vmatpush.msra.mxu2 %v233_v5 }
  0x17   : > { %647 = vmatpush.msra.mxu3 %v233_v5 }
  0x18   : > { %302 = vmatpush.msra.mxu0 %v232_v6  ;;  %648 = vmatpush.msra.mxu2 %v232_v6 }
  0x19   : > { %649 = vmatpush.msra.mxu3 %v232_v6 }
  0x1a   : > { %303 = vmatpush.msra.mxu0 %v231_v7  ;;  %650 = vmatpush.msra.mxu2 %v231_v7 }
  0x1b   : > { %602 = vmatmul.msk.f32.vlgmr.msra.gmra.mxu0 %vm239_vm0, %v215_v8  ;;  %609 = vmatmul.msk.f32.vlgmr.msra.gmra.mxu2 %vm239_vm0, %v222_v9 }
  0x1c   : > { %651 = vmatpush.msra.mxu3 %v231_v7 }
  0x1d   : > { %617 = vmatmul.msk.f32.vlgmr.msra.gmra.mxu3 %vm239_vm0, %v230_v16 }
  0x1e   : > { %652 = vmatpush.msrb.mxu3 %v370_v24 }
  0x23   : > { %603 = vmatmul.msk.f32.gmra.mxu0 %vm239_vm0, %v216_v10  ;;  %610 = vmatmul.msk.f32.gmra.mxu2 %vm239_vm0, %v223_v11 }
  0x2b   : > { %604 = vmatmul.msk.f32.gmra.mxu0 %vm239_vm0, %v217_v12  ;;  %611 = vmatmul.msk.f32.gmra.mxu2 %vm239_vm0, %v224_v13 }
  0x33   : > { %605 = vmatmul.msk.f32.gmra.mxu0 %vm239_vm0, %v218_v14  ;;  %612 = vmatmul.msk.f32.gmra.mxu2 %vm239_vm0, %v225_v15 }
  0x3b   : > { %606 = vmatmul.msk.f32.gmra.mxu0 %vm239_vm0, %v219_v17  ;;  %613 = vmatmul.msk.f32.gmra.mxu2 %vm239_vm0, %v226_v18 }
  0x43   : > { %607 = vmatmul.msk.f32.gmra.mxu0 %vm239_vm0, %v220_v19  ;;  %614 = vmatmul.msk.f32.gmra.mxu2 %vm239_vm0, %v227_v20 }
  0x4b   : > { %608 = vmatmul.msk.f32.gmra.mxu0 %vm239_vm0, %v221_v21  ;;  %615 = vmatmul.msk.f32.gmra.mxu2 %vm239_vm0, %v228_v22 }
  0x53   : > { %616 = vmatmul.msk.f32.gmra.mxu2 %vm239_vm0, %v229_v23 }
  0x98   : > { %v305_v25 = vpop.f32.mrf.mxu0 }
  0x99   : > { %354 = vst.msk [vmem:[%s773_s17] sm:$0xff] %vm353_vm1, %v305_v25  ;;  %618 = vmatmul.msk.f32.vlgmr.msra.gmra.mxu1 %vm353_vm1, %v305_v25 }
  0x9e   : > { %v326_v26 = vpop.f32.mrf.mxu2 }
  0x9f   : > { %361 = vst.msk [vmem:[%s773_s17 + $0x38] sm:$0xff] %vm353_vm1, %v326_v26 }
  0xa0   : > { %v308_v27 = vpop.f32.mrf.mxu0  ;;  %v350_v34 = vpop.f32.mrf.mxu3 }
  0xa1   : > { %355 = vst.msk [vmem:[%s773_s17 + $0x8] sm:$0xff] %vm353_vm1, %v308_v27  ;;  %619 = vmatmul.msk.f32.gmra.mxu1 %vm353_vm1, %v308_v27 }
  0xa2   : > { %369 = vst.msk [vmem:[%s773_s17 + $0x78] sm:$0xff] %vm353_vm1, %v350_v34 }
  0xa6   : > { %v329_v28 = vpop.f32.mrf.mxu2 }
  0xa7   : > { %362 = vst.msk [vmem:[%s773_s17 + $0x40] sm:$0xff] %vm353_vm1, %v329_v28 }
  0xa8   : > { %v311_v29 = vpop.f32.mrf.mxu0 }
  0xa9   : > { %356 = vst.msk [vmem:[%s773_s17 + $0x10] sm:$0xff] %vm353_vm1, %v311_v29  ;;  %620 = vmatmul.msk.f32.gmra.mxu1 %vm353_vm1, %v311_v29 }
  0xae   : > { %v332_v30 = vpop.f32.mrf.mxu2 }
  0xaf   : > { %363 = vst.msk [vmem:[%s773_s17 + $0x48] sm:$0xff] %vm353_vm1, %v332_v30  ;;  %627 = vmatmul.msk.f32.vlgmr.msrb.gmra.mxu3 %vm353_vm1, %v332_v30 }
  0xb0   : > { %v314_v31 = vpop.f32.mrf.mxu0 }
  0xb1   : > { %357 = vst.msk [vmem:[%s773_s17 + $0x18] sm:$0xff] %vm353_vm1, %v314_v31  ;;  %621 = vmatmul.msk.f32.gmra.mxu1 %vm353_vm1, %v314_v31 }
  0xb6   : > { %v335_v32 = vpop.f32.mrf.mxu2 }
  0xb7   : > { %364 = vst.msk [vmem:[%s773_s17 + $0x50] sm:$0xff] %vm353_vm1, %v335_v32  ;;  %628 = vmatmul.msk.f32.gmra.mxu3 %vm353_vm1, %v335_v32 }
  0xb8   : > { %v317_v33 = vpop.f32.mrf.mxu0 }
  0xb9   : > { %358 = vst.msk [vmem:[%s773_s17 + $0x20] sm:$0xff] %vm353_vm1, %v317_v33  ;;  %622 = vmatmul.msk.f32.gmra.mxu1 %vm353_vm1, %v317_v33 }
  0xbe   : > { %v338_v35 = vpop.f32.mrf.mxu2 }
  0xbf   : > { %365 = vst.msk [vmem:[%s773_s17 + $0x58] sm:$0xff] %vm353_vm1, %v338_v35  ;;  %629 = vmatmul.msk.f32.gmra.mxu3 %vm353_vm1, %v338_v35 }
  0xc0   : > { %v320_v36 = vpop.f32.mrf.mxu0 }
  0xc1   : > { %359 = vst.msk [vmem:[%s773_s17 + $0x28] sm:$0xff] %vm353_vm1, %v320_v36  ;;  %623 = vmatmul.msk.f32.gmra.mxu1 %vm353_vm1, %v320_v36 }
  0xc6   : > { %v341_v37 = vpop.f32.mrf.mxu2 }
  0xc7   : > { %366 = vst.msk [vmem:[%s773_s17 + $0x60] sm:$0xff] %vm353_vm1, %v341_v37  ;;  %630 = vmatmul.msk.f32.gmra.mxu3 %vm353_vm1, %v341_v37 }
  0xc8   : > { %v323_v38 = vpop.f32.mrf.mxu0 }
  0xc9   : > { %360 = vst.msk [vmem:[%s773_s17 + $0x30] sm:$0xff] %vm353_vm1, %v323_v38  ;;  %624 = vmatmul.msk.f32.gmra.mxu1 %vm353_vm1, %v323_v38 }
  0xce   : > { %v344_v39 = vpop.f32.mrf.mxu2 }
  0xcf   : > { %367 = vst.msk [vmem:[%s773_s17 + $0x68] sm:$0xff] %vm353_vm1, %v344_v39  ;;  %631 = vmatmul.msk.f32.gmra.mxu3 %vm353_vm1, %v344_v39 }
  0xd1   : > { %625 = vmatmul.msk.f32.gmra.mxu1 %vm353_vm1, %v326_v26 }
  0xd6   : > { %v347_v40 = vpop.f32.mrf.mxu2 }
  0xd7   : > { %368 = vst.msk [vmem:[%s773_s17 + $0x70] sm:$0xff] %vm353_vm1, %v347_v40  ;;  %632 = vmatmul.msk.f32.gmra.mxu3 %vm353_vm1, %v347_v40 }
  0xd9   : > { %626 = vmatmul.msk.f32.gmra.mxu1 %vm353_vm1, %v329_v28 }
  0xdf   : > { %633 = vmatmul.msk.f32.gmra.mxu3 %vm353_vm1, %v350_v34 }
 0x116   : > { %v436_v41 = vpop.f32.mrf.mxu1 }
 0x117   : > { %485 = vst.msk [vmem:[%s827_s20] sm:$0xff] %vm484_vm2, %v436_v41 }
 0x11e   : > { %v439_v42 = vpop.f32.mrf.mxu1 }
 0x11f   : > { %486 = vst.msk [vmem:[%s827_s20 + $0x8] sm:$0xff] %vm484_vm2, %v439_v42 }
 0x126   : > { %v442_v43 = vpop.f32.mrf.mxu1 }
 0x127   : > { %487 = vst.msk [vmem:[%s827_s20 + $0x10] sm:$0xff] %vm484_vm2, %v442_v43 }
 0x12e   : > { %v445_v44 = vpop.f32.mrf.mxu1 }
 0x12f   : > { %488 = vst.msk [vmem:[%s827_s20 + $0x18] sm:$0xff] %vm484_vm2, %v445_v44 }
 0x132   : > { %v463_v45 = vpop.f32.mrf.mxu3 }
 0x133   : > { %494 = vst.msk [vmem:[%s827_s20 + $0x48] sm:$0xff] %vm484_vm2, %v463_v45 }
 0x136   : > { %v448_v46 = vpop.f32.mrf.mxu1 }
 0x137   : > { %489 = vst.msk [vmem:[%s827_s20 + $0x20] sm:$0xff] %vm484_vm2, %v448_v46 }
 0x13a   : > { %v466_v47 = vpop.f32.mrf.mxu3 }
 0x13b   : > { %495 = vst.msk [vmem:[%s827_s20 + $0x50] sm:$0xff] %vm484_vm2, %v466_v47 }
 0x13e   : > { %v451_v48 = vpop.f32.mrf.mxu1 }
 0x13f   : > { %490 = vst.msk [vmem:[%s827_s20 + $0x28] sm:$0xff] %vm484_vm2, %v451_v48 }
 0x142   : > { %v469_v49 = vpop.f32.mrf.mxu3 }
 0x143   : > { %496 = vst.msk [vmem:[%s827_s20 + $0x58] sm:$0xff] %vm484_vm2, %v469_v49 }
 0x146   : > { %v454_v50 = vpop.f32.mrf.mxu1 }
 0x147   : > { %491 = vst.msk [vmem:[%s827_s20 + $0x30] sm:$0xff] %vm484_vm2, %v454_v50 }
 0x14a   : > { %v472_v51 = vpop.f32.mrf.mxu3 }
 0x14b   : > { %497 = vst.msk [vmem:[%s827_s20 + $0x60] sm:$0xff] %vm484_vm2, %v472_v51 }
 0x14e   : > { %v457_v52 = vpop.f32.mrf.mxu1 }
 0x14f   : > { %492 = vst.msk [vmem:[%s827_s20 + $0x38] sm:$0xff] %vm484_vm2, %v457_v52 }
 0x152   : > { %v475_v53 = vpop.f32.mrf.mxu3 }
 0x153   : > { %498 = vst.msk [vmem:[%s827_s20 + $0x68] sm:$0xff] %vm484_vm2, %v475_v53 }
 0x156   : > { %v460_v54 = vpop.f32.mrf.mxu1 }
 0x157   : > { %493 = vst.msk [vmem:[%s827_s20 + $0x40] sm:$0xff] %vm484_vm2, %v460_v54 }
 0x15a   : > { %v478_v55 = vpop.f32.mrf.mxu3 }
 0x15b   : > { %499 = vst.msk [vmem:[%s827_s20 + $0x70] sm:$0xff] %vm484_vm2, %v478_v55 }
 0x162   : > { %v481_v56 = vpop.f32.mrf.mxu3 }
 0x163   : > { %500 = vst.msk [vmem:[%s827_s20 + $0x78] sm:$0xff] %vm484_vm2, %v481_v56 }
 0x164 PF: > { %s15_s15 = sadd.s32 1, %s667_s15  }
 0x165   : > { %p12_p4 = scmp.ge.s32.totalorder %s15_s15, 4  }
 0x167   :  { %14 = sbr.rel (!%p12_p4) target bundleno = 1 (0x1), region = 74 }

</bundles_post_ra>
